<compile_context>
chip_gen: v7x
topology: tpu7x:2x2x1
jax: 0.10.0
libtpu: 0.0.40
codegen_flags: <defaults>
</compile_context>

<pallas_src>
import functools

import jax
import jax.numpy as jnp
from jax.experimental import pallas as pl
from jax.experimental.pallas import tpu as pltpu


# ---------------------------------------------------------------------------
# helpers
# ---------------------------------------------------------------------------
def _largest_divisor(n, limit, multiple):
    """Largest d with d | n, d <= limit and d % multiple == 0; None if none."""
    for d in range(min(n, limit), 0, -1):
        if n % d == 0 and d % multiple == 0:
            return d
    return None


# ---------------------------------------------------------------------------
# fused single-pass path: pool + MLP gate + scale in one kernel (x read once)
# ---------------------------------------------------------------------------
def _fused_kernel(x_ref, w1t_ref, w2t_ref, o_ref, *, inv_l):
    x = x_ref[...]                                                # (bt, C, L)
    y = jnp.sum(x.astype(jnp.float32), axis=-1) * inv_l           # (bt, C)
    h = jnp.maximum(
        jnp.dot(y, w1t_ref[...], preferred_element_type=jnp.float32), 0.0)
    s = jax.nn.sigmoid(
        jnp.dot(h, w2t_ref[...], preferred_element_type=jnp.float32))
    # Lane-axis broadcast of the gate (same pattern as flash-attention rescale).
    o_ref[...] = x * s[:, :, None].astype(x.dtype)


def _se_fused(x, w1t, w2t, budget):
    b, c, l = x.shape
    h = w1t.shape[1]
    itemsize = x.dtype.itemsize
    per_elem = c * l * itemsize
    b_tile = max((d for d in range(1, b + 1)
                  if b % d == 0 and d * per_elem <= budget), default=1)
    grid = (b // b_tile,)
    kernel = functools.partial(_fused_kernel, inv_l=1.0 / l)
    return pl.pallas_call(
        kernel,
        out_shape=jax.ShapeDtypeStruct((b, c, l), x.dtype),
        grid=grid,
        in_specs=[
            pl.BlockSpec((b_tile, c, l), lambda i: (i, 0, 0)),
            pl.BlockSpec((c, h), lambda i: (0, 0)),   # resident weights
            pl.BlockSpec((h, c), lambda i: (0, 0)),   # resident weights
        ],
        out_specs=pl.BlockSpec((b_tile, c, l), lambda i: (i, 0, 0)),
        compiler_params=pltpu.CompilerParams(dimension_semantics=("parallel",)),
        cost_estimate=pl.CostEstimate(
            flops=3 * b * c * l + 4 * b * c * h,
            transcendentals=b * c,
            bytes_accessed=2 * b * c * l * itemsize + 2 * c * h * 4),
    )(x, w1t, w2t)


# ---------------------------------------------------------------------------
# stage 1: squeeze (mean over L) + excitation MLP  ->  gate s of shape (B, C)
# ---------------------------------------------------------------------------
def _gate_kernel(x_ref, w1t_ref, w2t_ref, s_ref, acc_ref, *, inv_l):
    j = pl.program_id(1)  # L-reduction axis (innermost, "arbitrary")

    @pl.when(j == 0)
    def _init():
        acc_ref[...] = jnp.zeros_like(acc_ref)

    # Accumulate the pooling sum in f32 (per-tile cast only, not whole tensor).
    acc_ref[...] += jnp.sum(x_ref[...].astype(jnp.float32), axis=-1)

    @pl.when(j == pl.num_programs(1) - 1)
    def _finalize():
        y = acc_ref[...] * inv_l                                    # (bt, C)
        # Tiny MLP; degenerate matmuls are negligible vs the HBM traffic.
        h = jnp.maximum(
            jnp.dot(y, w1t_ref[...], preferred_element_type=jnp.float32), 0.0)
        s_ref[...] = jax.nn.sigmoid(
            jnp.dot(h, w2t_ref[...], preferred_element_type=jnp.float32))


def _se_gate(x, w1t, w2t):
    b, c, l = x.shape
    h = w1t.shape[1]
    itemsize = x.dtype.itemsize
    budget = 2 << 20  # ~2 MiB per pipelined input block (safe on v5e/v6e/v7x)

    # Batch tile: gate-output BlockSpec needs a multiple of 8 or the full batch.
    cands = [d for d in range(b, 0, -1) if b % d == 0 and (d % 8 == 0 or d == b)]
    b_tile = next((d for d in cands if d * c * 128 * itemsize <= budget),
                  min(cands))
    # Length tile: multiple of 128 (or full L), sized to the VMEM budget.
    cap = max(128, budget // max(1, b_tile * c * itemsize))
    l_tile = _largest_divisor(l, min(l, cap), 128) or l
    # TODO(synk): mask partial L tiles if non-divisor L tiling is ever needed
    # (would otherwise bias the mean).

    grid = (b // b_tile, l // l_tile)
    kernel = functools.partial(_gate_kernel, inv_l=1.0 / l)
    return pl.pallas_call(
        kernel,
        out_shape=jax.ShapeDtypeStruct((b, c), jnp.float32),
        grid=grid,
        in_specs=[
            pl.BlockSpec((b_tile, c, l_tile), lambda i, j: (i, 0, j)),
            pl.BlockSpec((c, h), lambda i, j: (0, 0)),   # resident weights
            pl.BlockSpec((h, c), lambda i, j: (0, 0)),   # resident weights
        ],
        out_specs=pl.BlockSpec((b_tile, c), lambda i, j: (i, 0)),
        scratch_shapes=[pltpu.VMEM((b_tile, c), jnp.float32)],
        compiler_params=pltpu.CompilerParams(
            dimension_semantics=("parallel", "arbitrary")),
        cost_estimate=pl.CostEstimate(
            flops=2 * b * c * l + 4 * b * c * h,
            transcendentals=b * c,
            bytes_accessed=b * c * l * itemsize + 2 * c * h * 4 + b * c * 4),
    )(x, w1t, w2t)


# ---------------------------------------------------------------------------
# stage 2: scale pass out = x * s[:, :, None]   (memory-bound, lane-dense tiles)
# ---------------------------------------------------------------------------
def _scale_bcast_kernel(x_ref, s_ref, o_ref):
    # s block is (r_tile, 1): broadcasts over the lane axis for free.
    o_ref[...] = x_ref[...] * s_ref[...].astype(x_ref.dtype)


def _scale_expand_kernel(x_ref, s_ref, e_ref, o_ref):
    # Expand the per-channel gate across the folded (channel, L) lane axis with
    # a small MXU matmul against a constant 0/1 expansion matrix (no reshapes).
    gate = jnp.dot(s_ref[...], e_ref[...], preferred_element_type=jnp.float32)
    o_ref[...] = x_ref[...] * gate.astype(x_ref.dtype)


def _se_scale(x, s):
    b, c, l = x.shape
    itemsize = x.dtype.itemsize
    budget = 1 << 20          # per-block budget; double-buffered in+out stays small
    target_lanes = 512        # ~85% of HBM roofline on v6e; VMEM-safe on v7x

    if l % 128 == 0:
        # L is already lane-dense: tile (B*C) rows x L lanes directly.
        c_inner = 1
        l_tile = _largest_divisor(l, min(l, target_lanes), 128)
    else:
        # Small / unaligned L: fold channel groups into the lane axis so loads
        # and stores are lane-dense, e.g. (B, C, 16) -> (B*C/ci, ci*16).
        c_inner = _largest_divisor(c, max(1, target_lanes // l), 1) or 1
        l_tile = c_inner * l

    rows, lanes = (b * c) // c_inner, c_inner * l
    x2 = x.reshape(rows, lanes)                         # free, contiguous reshape
    row_cap = max(8, budget // (l_tile * itemsize))
    r_tile = _largest_divisor(rows, min(rows, row_cap), 8) or rows
    grid = (rows // r_tile, lanes // l_tile)

    common = dict(
        out_shape=jax.ShapeDtypeStruct((rows, lanes), x.dtype),
        grid=grid,
        out_specs=pl.BlockSpec((r_tile, l_tile), lambda i, j: (i, j)),
        compiler_params=pltpu.CompilerParams(
            dimension_semantics=("parallel", "parallel")),
        cost_estimate=pl.CostEstimate(
            flops=rows * lanes * (1 + 2 * c_inner),
            transcendentals=0,
            bytes_accessed=2 * rows * lanes * itemsize + b * c * 4),
    )

    if c_inner == 1:
        s2 = s.reshape(rows, 1)
        out2 = pl.pallas_call(
            _scale_bcast_kernel,
            in_specs=[
                pl.BlockSpec((r_tile, l_tile), lambda i, j: (i, j)),
                pl.BlockSpec((r_tile, 1), lambda i, j: (i, 0)),
            ],
            **common,
        )(x2, s2)
    else:
        s2 = s.reshape(rows, c_inner)
        # Constant expansion matrix E[ci, ci*L + l] = 1 (resident in VMEM).
        e = (jnp.arange(c_inner)[:, None]
             == (jnp.arange(c_inner * l) // l)[None, :]).astype(jnp.float32)
        out2 = pl.pallas_call(
            _scale_expand_kernel,
            in_specs=[
                pl.BlockSpec((r_tile, l_tile), lambda i, j: (i, j)),
                pl.BlockSpec((r_tile, c_inner), lambda i, j: (i, 0)),
                pl.BlockSpec((c_inner, c_inner * l), lambda i, j: (0, 0)),
            ],
            **common,
        )(x2, s2, e)
    return out2.reshape(b, c, l)


# ---------------------------------------------------------------------------
# public entry point
# ---------------------------------------------------------------------------
def se_layer(x, w1, w2, *, fused_block_budget=2 << 20):
    """x: (B, C, L) NCL; w1: (C//r, C) PyTorch Linear weight; w2: (C, C//r)."""
    w1t = jnp.asarray(w1).T  # (C, H)
    w2t = jnp.asarray(w2).T  # (H, C)
    b, c, l = x.shape
    if c * l * x.dtype.itemsize <= fused_block_budget:
        # One batch element's (C, L) plane fits a VMEM block: single fused pass,
        # x is read from HBM only once (2N traffic instead of 3N).
        return _se_fused(x, w1t, w2t, fused_block_budget)
    s = _se_gate(x, w1t, w2t)        # (B, C) float32 gate
    return _se_scale(x, s)           # (B, C, L) in x.dtype


def se_layer_ref(x, w1, w2):
    """Pure-JAX reference mirroring the PyTorch forward."""
    y = jnp.mean(x.astype(jnp.float32), axis=-1)                 # (B, C)
    h = jnp.maximum(y @ w1.T, 0.0)                               # (B, H)
    s = jax.nn.sigmoid(h @ w2.T)                                 # (B, C)
    return (x.astype(jnp.float32) * s[:, :, None]).astype(x.dtype)


if __name__ == "__main__":
    # Small shapes consistent with the module: channel=64, reduction=32 -> hidden=2.
    B, C, L = 2, 64, 16
    REDUCTION = 32
    H = C // REDUCTION

    key = jax.random.PRNGKey(0)
    kx, k1, k2 = jax.random.split(key, 3)

    x = jax.random.normal(kx, (B, C, L), dtype=jnp.float32)
    # Deterministic synthetic weights with PyTorch Linear shapes (out, in).
    w1 = jax.random.normal(k1, (H, C), dtype=jnp.float32) * (1.0 / jnp.sqrt(C))
    w2 = jax.random.normal(k2, (C, H), dtype=jnp.float32) * (1.0 / jnp.sqrt(H))

    ref = jax.block_until_ready(se_layer_ref(x, w1, w2))

    # Path 1: fused single-pass kernel (default for shapes that fit VMEM blocks).
    out_fused = jax.block_until_ready(se_layer(x, w1, w2))
    assert out_fused.shape == (B, C, L)
    assert jnp.allclose(out_fused, ref, atol=1e-5, rtol=1e-5)

    # Path 2: two-stage pipelined path (forced), used for large tensors.
    out_two = jax.block_until_ready(se_layer(x, w1, w2, fused_block_budget=0))
    assert out_two.shape == (B, C, L)
    assert jnp.allclose(out_two, ref, atol=1e-5, rtol=1e-5)

    print("KERNEL_OK")
</pallas_src>

<mosaic_0001>
module attributes {stable_mosaic.version = 11 : i64} {
  func.func @_fused_kernel(%arg0: i32, %arg1: memref<2x64x16xf32, #tpu.memory_space<vmem>>, %arg2: memref<64x2xf32, #tpu.memory_space<vmem>>, %arg3: memref<2x64xf32, #tpu.memory_space<vmem>>, %arg4: memref<2x64x16xf32, #tpu.memory_space<vmem>>) attributes {dimension_semantics = [#tpu.dimension_semantics<parallel>], iteration_bounds = array<i64: 1>, scalar_prefetch = 0 : i64, scratch_operands = 0 : i64, tpu.core_type = #tpu.core_type<tc>, window_params = [{transform_indices = @transform_0, window_bounds = array<i64: 2, 64, 16>}, {pipeline_mode = #tpu.pipeline_mode<synchronous>, transform_indices = @transform_1, window_bounds = array<i64: 64, 2>}, {pipeline_mode = #tpu.pipeline_mode<synchronous>, transform_indices = @transform_2, window_bounds = array<i64: 2, 64>}, {transform_indices = @transform_3, window_bounds = array<i64: 2, 64, 16>}]} {
    %c0 = arith.constant 0 : index
    %c0_0 = arith.constant 0 : index
    %c0_1 = arith.constant 0 : index
    %0 = vector.load %arg1[%c0, %c0_0, %c0_1] : memref<2x64x16xf32, #tpu.memory_space<vmem>>, vector<2x64x16xf32>
    %cst = arith.constant dense<0.000000e+00> : vector<2x64xf32>
    %1 = vector.multi_reduction <add>, %0, %cst [2] : vector<2x64x16xf32> to vector<2x64xf32>
    %cst_2 = arith.constant 6.250000e-02 : f32
    %2 = vector.broadcast %cst_2 : f32 to vector<2x64xf32>
    %3 = arith.mulf %1, %2 : vector<2x64xf32>
    %c0_3 = arith.constant 0 : index
    %c0_4 = arith.constant 0 : index
    %4 = vector.load %arg2[%c0_3, %c0_4] : memref<64x2xf32, #tpu.memory_space<vmem>>, vector<64x2xf32>
    %cst_5 = arith.constant dense<0.000000e+00> : vector<2x2xf32>
    %5 = tpu.matmul %3, %4, %cst_5 {dimension_numbers = #tpu.dot_dimension_numbers<[1], [0], [0], [1], [0, 0, 1, 1], [], []>} : vector<2x64xf32>, vector<64x2xf32>, vector<2x2xf32> -> vector<2x2xf32>
    %cst_6 = arith.constant 0.000000e+00 : f32
    %6 = vector.broadcast %cst_6 : f32 to vector<2x2xf32>
    %7 = arith.maximumf %5, %6 : vector<2x2xf32>
    %c0_7 = arith.constant 0 : index
    %c0_8 = arith.constant 0 : index
    %8 = vector.load %arg3[%c0_7, %c0_8] : memref<2x64xf32, #tpu.memory_space<vmem>>, vector<2x64xf32>
    %cst_9 = arith.constant dense<0.000000e+00> : vector<2x64xf32>
    %9 = tpu.matmul %7, %8, %cst_9 {dimension_numbers = #tpu.dot_dimension_numbers<[1], [0], [0], [1], [0, 0, 1, 1], [], []>} : vector<2x2xf32>, vector<2x64xf32>, vector<2x64xf32> -> vector<2x64xf32>
    %10 = arith.negf %9 : vector<2x64xf32>
    %11 = math.exp %10 : vector<2x64xf32>
    %cst_10 = arith.constant 1.000000e+00 : f32
    %12 = vector.broadcast %cst_10 : f32 to vector<2x64xf32>
    %13 = arith.addf %12, %11 : vector<2x64xf32>
    %14 = arith.divf %12, %13 : vector<2x64xf32>
    %15 = vector.shape_cast %14 : vector<2x64xf32> to vector<2x64x1xf32>
    %16 = vector.broadcast %15 : vector<2x64x1xf32> to vector<2x64x16xf32>
    %17 = arith.mulf %0, %16 : vector<2x64x16xf32>
    %c0_11 = arith.constant 0 : index
    %c0_12 = arith.constant 0 : index
    %c0_13 = arith.constant 0 : index
    %18 = vector.load %arg4[%c0_11, %c0_12, %c0_13] : memref<2x64x16xf32, #tpu.memory_space<vmem>>, vector<2x64x16xf32>
    tpu.vector_store %arg4[%c0_11, %c0_12, %c0_13], %17 {strides = array<i32>} : memref<2x64x16xf32, #tpu.memory_space<vmem>>, vector<2x64x16xf32>,
    return
  }
  func.func @transform_0(%arg0: i32) -> (i32, i32, i32) {
    %c0_i32 = arith.constant 0 : i32
    %c0_i32_0 = arith.constant 0 : i32
    %c0_i32_1 = arith.constant 0 : i32
    return %arg0, %c0_i32, %c0_i32_0 : i32, i32, i32
  }
  func.func @transform_1(%arg0: i32) -> (i32, i32) {
    %c0_i32 = arith.constant 0 : i32
    %c0_i32_0 = arith.constant 0 : i32
    %c0_i32_1 = arith.constant 0 : i32
    return %c0_i32, %c0_i32_0 : i32, i32
  }
  func.func @transform_2(%arg0: i32) -> (i32, i32) {
    %c0_i32 = arith.constant 0 : i32
    %c0_i32_0 = arith.constant 0 : i32
    %c0_i32_1 = arith.constant 0 : i32
    return %c0_i32, %c0_i32_0 : i32, i32
  }
  func.func @transform_3(%arg0: i32) -> (i32, i32, i32) {
    %c0_i32 = arith.constant 0 : i32
    %c0_i32_0 = arith.constant 0 : i32
    %c0_i32_1 = arith.constant 0 : i32
    return %arg0, %c0_i32, %c0_i32_0 : i32, i32, i32
  }
}

</mosaic_0001>

<bundles_post_ra>
// kernel: tpu_custom_call.1
= control target key start
LH: loop header
LB: loop body
LE: loop exit
PB: predicated region body
PF: predicated region fallthrough
CT: control target
= control target key end

     0   :  { %vm30_vm0 = vcmask 130048   ;;  %v538_v35 = vmov 0.0|0.0   ;;  %vm539_vm1 = vmmov 0   ;;  %v540_v45 = vmov 0.0   ;;  %s804_s0 = inlined_call_operand.vmem [shape: f32[2,64,16], index: 0, kind: input, shape index: {}]   ;;  %s805_s1 = inlined_call_operand.vmem [shape: f32[64,2], index: 1, kind: input, shape index: {}]   ;;  %s806_s2 = inlined_call_operand.vmem [shape: f32[2,64], index: 2, kind: input, shape index: {}]   ;;  %s807_s3 = inlined_call_operand.vmem [shape: f32[2,64,16], index: 3, kind: output, shape index: {}]  }
   0x1   :  { %v564_v0 = vld [vmem:[%s804_s0 + $0x40] sm:$0xff]  ;;  %v574_v2 = vld [vmem:[%s804_s0 + $0x48] sm:$0xff]  ;;  %v592_v8 = vld [vmem:[%s804_s0 + $0x50] sm:$0xff]  ;;  %519 = vmatprep.subr.bf16.mxu0 %v538_v35  ;;  %511 = vmatprep.mubr.msk.f32.mxu0 %vm539_vm1, %v540_v45  ;;  %v119_v50 = vlaneseq  ;;  %vm130_vm2 = vcmask 130112   ;;  %vm137_vm3 = vcmask 195712   ;;  %vm144_vm4 = vcmask 261312  }
   0x2   :  { %v569_v1 = vld [vmem:[%s804_s0] sm:$0xff]  ;;  %v55_v3 = vsel %vm30_vm0, %v564_v0, 0.0  ;;  %v583_v5 = vld [vmem:[%s804_s0 + $0x8] sm:$0xff]  ;;  %v58_v6 = vsel %vm30_vm0, %v574_v2, 0.0  ;;  %v597_v9 = vld [vmem:[%s804_s0 + $0x10] sm:$0xff]  ;;  %v61_v10 = vsel %vm30_vm0, %v592_v8, 0.0  ;;  %514 = vmatprep.subr.mxu1 %v540_v45  ;;  %516 = vmatprep.mubr.msk.f32.mxu1 %vm539_vm1, %v540_v45 }
   0x3   :  { %v31_v4 = vsel %vm30_vm0, %v569_v1, 0.0  ;;  %56 = vadd.xlane.f32.xlu1 %v55_v3  ;;  %v34_v7 = vsel %vm30_vm0, %v583_v5, 0.0  ;;  %v37_v11 = vsel %vm30_vm0, %v597_v9, 0.0  ;;  %v606_v12 = vld [vmem:[%s804_s0 + $0x58] sm:$0xff]  ;;  %v620_v16 = vld [vmem:[%s804_s0 + $0x60] sm:$0xff]  ;;  %v634_v20 = vld [vmem:[%s804_s0 + $0x68] sm:$0xff] }
   0x4   :  { %32 = vadd.xlane.f32.xlu0 %v31_v4  ;;  %v611_v13 = vld [vmem:[%s804_s0 + $0x18] sm:$0xff]  ;;  %v64_v14 = vsel %vm30_vm0, %v606_v12, 0.0  ;;  %v625_v17 = vld [vmem:[%s804_s0 + $0x20] sm:$0xff]  ;;  %v67_v18 = vsel %vm30_vm0, %v620_v16, 0.0  ;;  %v639_v21 = vld [vmem:[%s804_s0 + $0x28] sm:$0xff]  ;;  %v70_v22 = vsel %vm30_vm0, %v634_v20, 0.0 }
   0x5   :  { %v40_v15 = vsel %vm30_vm0, %v611_v13, 0.0  ;;  %v43_v19 = vsel %vm30_vm0, %v625_v17, 0.0  ;;  %v46_v23 = vsel %vm30_vm0, %v639_v21, 0.0  ;;  %v648_v24 = vld [vmem:[%s804_s0 + $0x70] sm:$0xff]  ;;  %v662_v28 = vld [vmem:[%s804_s0 + $0x78] sm:$0xff]  ;;  %v95_v32 = vld [vmem:[%s805_s1] sm:$0xff] }
   0x6   :  { %v653_v25 = vld [vmem:[%s804_s0 + $0x30] sm:$0xff]  ;;  %v73_v26 = vsel %vm30_vm0, %v648_v24, 0.0  ;;  %v667_v29 = vld [vmem:[%s804_s0 + $0x38] sm:$0xff]  ;;  %v76_v30 = vsel %vm30_vm0, %v662_v28, 0.0  ;;  %v96_v33 = vld [vmem:[%s805_s1 + $0x8] sm:$0xff]  ;;  %v120_v53 = vand.u32 127, %v119_v50 }
   0x7   :  { %59 = vadd.xlane.f32.xlu1 %v58_v6  ;;  %v49_v27 = vsel %vm30_vm0, %v653_v25, 0.0  ;;  %v52_v31 = vsel %vm30_vm0, %v667_v29, 0.0  ;;  %v520_v34 = vpack.c.bf16 %v96_v33, %v95_v32  ;;  %v97_v36 = vld [vmem:[%s805_s1 + $0x10] sm:$0xff]  ;;  %v98_v37 = vld [vmem:[%s805_s1 + $0x18] sm:$0xff]  ;;  %v99_v39 = vld [vmem:[%s805_s1 + $0x20] sm:$0xff]  ;;  %v697_v54 = vshrl.u32 %v119_v50, 7 }
   0x8   :  { %35 = vadd.xlane.f32.xlu0 %v34_v7  ;;  %v523_v38 = vpack.c.bf16 %v98_v37, %v97_v36  ;;  %v100_v40 = vld [vmem:[%s805_s1 + $0x28] sm:$0xff]  ;;  %v101_v42 = vld [vmem:[%s805_s1 + $0x30] sm:$0xff]  ;;  %v102_v43 = vld [vmem:[%s805_s1 + $0x38] sm:$0xff]  ;;  %v125_v57 = vadd.s32 4294967288, %v120_v53  ;;  %v132_v58 = vadd.s32 4294967280, %v120_v53  ;;  %v139_v59 = vadd.s32 4294967272, %v120_v53 }
   0x9   :  { %521 = vmatpush3.bf16.msra.mxu0 %v520_v34  ;;  %v526_v41 = vpack.c.bf16 %v100_v40, %v99_v39  ;;  %v529_v44 = vpack.c.bf16 %v102_v43, %v101_v42  ;;  %v146_v60 = vadd.s32 4294967264, %v120_v53  ;;  %v123_v61 = vsub.s32 %v120_v53, %v697_v54 }
   0xa   :  { %522 = vmatprep.subr.bf16.mxu0 %v538_v35  ;;  %v128_v3 = vsub.s32 %v125_v57, %v697_v54  ;;  %v135_v4 = vsub.s32 %v132_v58, %v697_v54  ;;  %v153_v6 = vadd.s32 4294967256, %v120_v53  ;;  %v142_v7 = vsub.s32 %v139_v59, %v697_v54 }
   0xb   :  { %62 = vadd.xlane.f32.xlu1 %v61_v10  ;;  %v160_v10 = vadd.s32 4294967248, %v120_v53  ;;  %vm151_vm5 = vcmask 326912   ;;  %vm158_vm6 = vcmask 392512   ;;  %v167_v36 = vadd.s32 4294967240, %v120_v53 }
   0xc   :  { %38 = vadd.xlane.f32.xlu0 %v37_v11  ;;  %v156_v32 = vsub.s32 %v153_v6, %v697_v54  ;;  %vm165_vm7 = vcmask 458112   ;;  %vm172_vm8 = vcmask 523712   ;;  %vm213_vm9 = vcmask 1041409  }
   0xd   :  { %524 = vmatpush3.bf16.msra.mxu0 %v523_v38  ;;  %vm215_vm10 = vcmask 523264   ;;  %vm294_vm11 = vcmask 1041408   ;;  %vm290_vm12 = vcmask 15360  }
   0xe   :  { %525 = vmatprep.subr.bf16.mxu0 %v538_v35 }
   0xf   :  { %65 = vadd.xlane.f32.xlu1 %v64_v14 }
  0x10   :  { %41 = vadd.xlane.f32.xlu0 %v40_v15  ;;  %v149_v15 = vsub.s32 %v146_v60, %v697_v54 }
  0x11   :  { %527 = vmatpush3.bf16.msra.mxu0 %v526_v41 }
  0x12   :  { %528 = vmatprep.subr.bf16.mxu0 %v538_v35  ;;  %v163_v35 = vsub.s32 %v160_v10, %v697_v54 }
  0x13   :  { %68 = vadd.xlane.f32.xlu1 %v67_v18 }
  0x14   :  { %44 = vadd.xlane.f32.xlu0 %v43_v19 }
  0x15   :  { %530 = vmatpush3.bf16.msra.mxu0 %v529_v44 }
  0x17   :  { %71 = vadd.xlane.f32.xlu1 %v70_v22 }
  0x18   :  { %47 = vadd.xlane.f32.xlu0 %v46_v23 }
  0x1b   :  { %74 = vadd.xlane.f32.xlu1 %v73_v26 }
  0x1c   :  { %50 = vadd.xlane.f32.xlu0 %v49_v27 }
  0x1f   :  { %77 = vadd.xlane.f32.xlu1 %v76_v30 }
  0x20   :  { %53 = vadd.xlane.f32.xlu0 %v52_v31 }
  0x90   :  { %v57_v46 = vpop.xlane.xlu1 %56 }
  0x91   :  { %v33_v47 = vpop.xlane.xlu0 %32  ;;  %v87_v18 = vmul.f32 0.0625, %v57_v46 }
  0x92   :  { %v79_v19 = vmul.f32 0.0625, %v33_v47 }
  0x93   :  { %v177_v41 = vrot.slane %v87_v18, %v123_v61 }
  0x94   :  { %v60_v48 = vpop.xlane.xlu1 %59  ;;  %v124_v42 = vrot.slane %v79_v19, %v123_v61 }
  0x95   :  { %v36_v49 = vpop.xlane.xlu0 %35  ;;  %v88_v11 = vmul.f32 0.0625, %v60_v48 }
  0x96   :  { %v80_v14 = vmul.f32 0.0625, %v36_v49 }
  0x97   :  { %v181_v37 = vrot.slane %v88_v11, %v128_v3 }
  0x98   :  { %v63_v51 = vpop.xlane.xlu1 %62  ;;  %v129_v38 = vrot.slane %v80_v14, %v128_v3 }
  0x99   :  { %v39_v52 = vpop.xlane.xlu0 %38  ;;  %v89_v22 = vmul.f32 0.0625, %v63_v51  ;;  %v182_v53 = vsel %vm130_vm2, %v181_v37, %v177_v41  ;;  %v376_v41 = vsub.s32 0, %v697_v54 }
  0x9a   :  { %v81_v23 = vmul.f32 0.0625, %v39_v52 }
  0x9b   :  { %v186_v43 = vrot.slane %v89_v22, %v135_v4 }
  0x9c   :  { %v66_v55 = vpop.xlane.xlu1 %65  ;;  %v136_v44 = vrot.slane %v81_v23, %v135_v4 }
  0x9d   :  { %v42_v56 = vpop.xlane.xlu0 %41  ;;  %v90_v30 = vmul.f32 0.0625, %v66_v55  ;;  %v170_v55 = vsub.s32 %v167_v36, %v697_v54  ;;  %v187_v59 = vsel %vm137_vm3, %v186_v43, %v182_v53 }
  0x9e   :  { %v82_v31 = vmul.f32 0.0625, %v42_v56  ;;  %v131_v56 = vsel %vm130_vm2, %v129_v38, %v124_v42 }
  0x9f   :  { %v191_v47 = vrot.slane %v90_v30, %v142_v7  ;;  %v138_v60 = vsel %vm137_vm3, %v136_v44, %v131_v56  ;;  %v411_v44 = vsub.s32 1, %v697_v54 }
  0xa0   :  { %v69_v62 = vpop.xlane.xlu1 %68  ;;  %v143_v48 = vrot.slane %v82_v31, %v142_v7 }
  0xa1   :  { %v45_v63 = vpop.xlane.xlu0 %44  ;;  %v91_v33 = vmul.f32 0.0625, %v69_v62  ;;  %v192_v4 = vsel %vm144_vm4, %v191_v47, %v187_v59 }
  0xa2   :  { %v83_v34 = vmul.f32 0.0625, %v45_v63  ;;  %v145_v6 = vsel %vm144_vm4, %v143_v48, %v138_v60 }
  0xa3   :  { %v196_v51 = vrot.slane %v91_v33, %v149_v15 }
  0xa4   :  { %v72_v26 = vpop.xlane.xlu1 %71  ;;  %v150_v52 = vrot.slane %v83_v34, %v149_v15 }
  0xa5   :  { %v48_v27 = vpop.xlane.xlu0 %47  ;;  %v92_v39 = vmul.f32 0.0625, %v72_v26  ;;  %v197_v11 = vsel %vm151_vm5, %v196_v51, %v192_v4 }
  0xa6   :  { %v84_v40 = vmul.f32 0.0625, %v48_v27  ;;  %v152_v14 = vsel %vm151_vm5, %v150_v52, %v145_v6 }
  0xa7   :  { %v201_v57 = vrot.slane %v92_v39, %v156_v32 }
  0xa8   :  { %v75_v45 = vpop.xlane.xlu1 %74  ;;  %v157_v58 = vrot.slane %v84_v40, %v156_v32  ;;  %v289_v32 = vld [vmem:[%s806_s2] sm:$0x3] }
  0xa9   :  { %v51_v46 = vpop.xlane.xlu0 %50  ;;  %v93_v49 = vmul.f32 0.0625, %v75_v45  ;;  %v202_v15 = vsel %vm158_vm6, %v201_v57, %v197_v11  ;;  %515 = vmatpush3.msk.msra.mxu1 %vm294_vm11, %v289_v32 }
  0xaa   :  { %v85_v50 = vmul.f32 0.0625, %v51_v46  ;;  %v159_v18 = vsel %vm158_vm6, %v157_v58, %v152_v14 }
  0xab   :  { %v206_v61 = vrot.slane %v93_v49, %v163_v35 }
  0xac   :  { %v164_v62 = vrot.slane %v85_v50, %v163_v35  ;;  %v78_v63 = vpop.xlane.xlu1 %77 }
  0xad   :  { %v54_v3 = vpop.xlane.xlu0 %53  ;;  %v94_v7 = vmul.f32 0.0625, %v78_v63  ;;  %v207_v23 = vsel %vm165_vm7, %v206_v61, %v202_v15 }
  0xae   :  { %v86_v10 = vmul.f32 0.0625, %v54_v3  ;;  %v166_v26 = vsel %vm165_vm7, %v164_v62, %v159_v18 }
  0xaf   :  { %v211_v19 = vrot.slane %v94_v7, %v170_v55 }
  0xb0   :  { %v171_v22 = vrot.slane %v86_v10, %v170_v55 }
  0xb1   :  { %v212_v30 = vsel %vm172_vm8, %v211_v19, %v207_v23 }
  0xb2   :  { %v173_v27 = vsel %vm172_vm8, %v171_v22, %v166_v26 }
  0xb3   :  { %v214_v31 = vsel %vm213_vm9, %v212_v30, %v173_v27 }
  0xb4   :  { %512 = vmatmul.mubr.msk.f32.vlgmr.msra.gmra.mrb[0].mxu0 %vm215_vm10, %v214_v31 }
 0x187   :  { %v284_v33 = vpop.f32.mrb[0].mxu0 }
 0x188   :  { %v288_v34 = vmax.f32 %v284_v33, 0.0  ;;  %v513_v35 = vpop.f32.mrb[1].mxu0 }
 0x18a   :  { %517 = vmatmul.mubr.msk.f32.vlgmr.msra.gmra.mrb[0].mxu1 %vm290_vm12, %v288_v34 }
 0x25d   :  { %v364_v36 = vpop.f32.mrb[0].mxu1 }
 0x25e   :  { %v483_v37 = vmul.f32 -1.442695, %v364_v36  ;;  %v518_v38 = vpop.f32.mrb[1].mxu1 }
 0x260   :  { %534 = vpow2.f32 %v483_v37 }
 0x26a   :  { %v535_v39 = vpop.eup %534 }
 0x26b   :  { %v371_v40 = vadd.f32 1.0, %v535_v39 }
 0x26d   :  { %536 = vrcp.f32 %v371_v40 }
 0x277   :  { %v537_v42 = vpop.eup %536 }
 0x278   :  { %v377_v43 = vrot.slane %v537_v42, %v376_v41  ;;  %v412_v45 = vrot.slane %v537_v42, %v411_v44 }
 0x27a   :  { %383 = vbcast.lane.b32.xlu1 %v377_v43, 264  ;;  %379 = vbcast.lane.b32.xlu0 %v377_v43, 256 }
 0x27e   :  { %387 = vbcast.lane.b32.xlu1 %v377_v43, 272  ;;  %395 = vbcast.lane.b32.xlu0 %v377_v43, 288 }
 0x282   :  { %391 = vbcast.lane.b32.xlu1 %v377_v43, 280  ;;  %403 = vbcast.lane.b32.xlu0 %v377_v43, 304 }
 0x286   :  { %399 = vbcast.lane.b32.xlu1 %v377_v43, 296  ;;  %414 = vbcast.lane.b32.xlu0 %v412_v45, 256 }
 0x28a   :  { %407 = vbcast.lane.b32.xlu1 %v377_v43, 312  ;;  %422 = vbcast.lane.b32.xlu0 %v412_v45, 272 }
 0x28e   :  { %418 = vbcast.lane.b32.xlu1 %v412_v45, 264  ;;  %430 = vbcast.lane.b32.xlu0 %v412_v45, 288 }
 0x292   :  { %426 = vbcast.lane.b32.xlu1 %v412_v45, 280  ;;  %438 = vbcast.lane.b32.xlu0 %v412_v45, 304 }
 0x296   :  { %434 = vbcast.lane.b32.xlu1 %v412_v45, 296 }
 0x29a   :  { %442 = vbcast.lane.b32.xlu1 %v412_v45, 312 }
 0x2ec   :  { %v384_v46 = vpop.permute.xlu1 %383  ;;  %v380_v47 = vpop.permute.xlu0 %379 }
 0x2ed   :  { %v445_v48 = vmul.f32 %v384_v46, %v583_v5  ;;  %v444_v49 = vmul.f32 %v380_v47, %v569_v1 }
 0x2ef   :  { %461 = vst.msk [vmem:[%s807_s3 + $0x8] sm:$0xff] %vm30_vm0, %v445_v48  ;;  %460 = vst.msk [vmem:[%s807_s3] sm:$0xff] %vm30_vm0, %v444_v49 }
 0x2f0   :  { %v388_v54 = vpop.permute.xlu1 %387  ;;  %v396_v50 = vpop.permute.xlu0 %395 }
 0x2f1   :  { %v446_v51 = vmul.f32 %v388_v54, %v597_v9  ;;  %v448_v52 = vmul.f32 %v396_v50, %v625_v17 }
 0x2f3   :  { %462 = vst.msk [vmem:[%s807_s3 + $0x10] sm:$0xff] %vm30_vm0, %v446_v51  ;;  %464 = vst.msk [vmem:[%s807_s3 + $0x20] sm:$0xff] %vm30_vm0, %v448_v52 }
 0x2f4   :  { %v392_v1 = vpop.permute.xlu1 %391  ;;  %v404_v5 = vpop.permute.xlu0 %403 }
 0x2f5   :  { %v447_v55 = vmul.f32 %v392_v1, %v611_v13  ;;  %v450_v53 = vmul.f32 %v404_v5, %v653_v25 }
 0x2f7   :  { %463 = vst.msk [vmem:[%s807_s3 + $0x18] sm:$0xff] %vm30_vm0, %v447_v55  ;;  %466 = vst.msk [vmem:[%s807_s3 + $0x30] sm:$0xff] %vm30_vm0, %v450_v53 }
 0x2f8   :  { %v400_v9 = vpop.permute.xlu1 %399  ;;  %v415_v17 = vpop.permute.xlu0 %414 }
 0x2f9   :  { %v449_v56 = vmul.f32 %v400_v9, %v639_v21  ;;  %v452_v57 = vmul.f32 %v415_v17, %v564_v0 }
 0x2fb   :  { %465 = vst.msk [vmem:[%s807_s3 + $0x28] sm:$0xff] %vm30_vm0, %v449_v56  ;;  %468 = vst.msk [vmem:[%s807_s3 + $0x40] sm:$0xff] %vm30_vm0, %v452_v57 }
 0x2fc   :  { %v408_v13 = vpop.permute.xlu1 %407  ;;  %v423_v25 = vpop.permute.xlu0 %422 }
 0x2fd   :  { %v451_v58 = vmul.f32 %v408_v13, %v667_v29  ;;  %v454_v59 = vmul.f32 %v423_v25, %v592_v8 }
 0x2ff   :  { %467 = vst.msk [vmem:[%s807_s3 + $0x38] sm:$0xff] %vm30_vm0, %v451_v58  ;;  %470 = vst.msk [vmem:[%s807_s3 + $0x50] sm:$0xff] %vm30_vm0, %v454_v59 }
 0x300   :  { %v419_v0 = vpop.permute.xlu1 %418  ;;  %v431_v21 = vpop.permute.xlu0 %430 }
 0x301   :  { %v453_v60 = vmul.f32 %v419_v0, %v574_v2  ;;  %v456_v61 = vmul.f32 %v431_v21, %v620_v16 }
 0x303   :  { %469 = vst.msk [vmem:[%s807_s3 + $0x48] sm:$0xff] %vm30_vm0, %v453_v60  ;;  %472 = vst.msk [vmem:[%s807_s3 + $0x60] sm:$0xff] %vm30_vm0, %v456_v61 }
 0x304   :  { %v427_v8 = vpop.permute.xlu1 %426  ;;  %v439_v29 = vpop.permute.xlu0 %438 }
 0x305   :  { %v455_v62 = vmul.f32 %v427_v8, %v606_v12  ;;  %v458_v63 = vmul.f32 %v439_v29, %v648_v24 }
 0x307   :  { %471 = vst.msk [vmem:[%s807_s3 + $0x58] sm:$0xff] %vm30_vm0, %v455_v62  ;;  %474 = vst.msk [vmem:[%s807_s3 + $0x70] sm:$0xff] %vm30_vm0, %v458_v63 }
 0x308   :  { %v435_v2 = vpop.permute.xlu1 %434 }
 0x309   :  { %v457_v16 = vmul.f32 %v435_v2, %v634_v20 }
 0x30b   :  { %473 = vst.msk [vmem:[%s807_s3 + $0x68] sm:$0xff] %vm30_vm0, %v457_v16 }
 0x30c   :  { %v443_v12 = vpop.permute.xlu1 %442 }
 0x30d   :  { %v459_v24 = vmul.f32 %v443_v12, %v662_v28 }
 0x30f   :  { %475 = vst.msk [vmem:[%s807_s3 + $0x78] sm:$0xff] %vm30_vm0, %v459_v24 }

</bundles_post_ra>
